<compile_context>
chip_gen: v5e
topology: v5e:2x2
jax: 0.10.0
libtpu: 0.0.40
codegen_flags: <defaults>
</compile_context>

<pallas_src>
import functools

import jax
import jax.numpy as jnp
from jax import lax
from jax.experimental import pallas as pl
from jax.experimental.pallas import tpu as pltpu


def _ls_loss_kernel(pred_ref, target_ref, mask_ref, partial_ref,
                    *, confidence, smooth_val, n_rows, tm):
    i = pl.program_id(0)

    p = pred_ref[...].astype(jnp.float32)                     # (tm, C)
    C = p.shape[-1]

    # Numerically stable log-softmax pieces along the class (lane) axis.
    m = jnp.max(p, axis=-1, keepdims=True)                    # (tm, 1)
    z = p - m                                                  # (tm, C)
    sum_exp = jnp.sum(jnp.exp(z), axis=-1, keepdims=True)      # (tm, 1)
    lse = jnp.log(sum_exp)                                     # (tm, 1)
    sum_z = jnp.sum(z, axis=-1, keepdims=True)                 # (tm, 1)

    # Gather z at the target column: compare + select + lane-sum (the only
    # remaining full-width (tm, C) extra work after the algebraic rewrite).
    tgt = target_ref[...]                                      # (tm, 1) int32
    col = lax.broadcasted_iota(jnp.int32, p.shape, 1)
    tgt_z = jnp.sum(jnp.where(col == tgt, z, 0.0),
                    axis=-1, keepdims=True)                    # (tm, 1)

    # sum_c logp = sum_z - C*lse ; logp[target] = tgt_z - lse
    per_row = -(jnp.float32(smooth_val) * (sum_z - jnp.float32(C) * lse)
                + jnp.float32(confidence - smooth_val) * (tgt_z - lse))

    # Per-row mask (applied after the class reduction) + tail-row masking so
    # padded rows of the last block contribute exactly 0 (and any NaN/Inf
    # from unspecified padded data is discarded by the select).
    row = lax.broadcasted_iota(jnp.int32, (per_row.shape[0], 1), 0)
    valid = (i * tm + row) < n_rows
    per_row = jnp.where(valid,
                        per_row * mask_ref[...].astype(jnp.float32),
                        jnp.float32(0.0))                      # (tm, 1)

    # Independent per-block partial sum (no cross-step serial dependency).
    partial_ref[0, 0] = jnp.sum(per_row)


def _choose_tm(n_rows, n_classes, itemsize, vmem_budget_bytes):
    """Largest row tile whose double-buffered pred tile fits the budget."""
    max_by_vmem = vmem_budget_bytes // (2 * n_classes * itemsize)
    tm = min(1024, max(8, max_by_vmem))
    tm = max(8, (tm // 8) * 8)          # keep sublane alignment
    if n_rows <= tm:
        return n_rows                    # single full-extent block is always legal
    return tm


def label_smoothing_loss_audio(pred, target, mask, *, classes, smoothing=0.0,
                               tm=None, vmem_budget_bytes=24 * 1024 * 1024):
    """Pallas TPU implementation of LabelSmoothingLossAudio.forward."""
    assert 0.0 <= smoothing <= 1.0
    N, C = pred.shape
    assert C == classes

    confidence = 1.0 - smoothing
    # Matches the PyTorch module (which divides by classes-1); guard the
    # classes==1 Python ZeroDivisionError edge case.
    smooth_val = smoothing / (classes - 1) if classes > 1 else 0.0

    if tm is None:
        tm = _choose_tm(N, C, jnp.dtype(pred.dtype).itemsize, vmem_budget_bytes)
    if tm >= N:
        tm = N                                   # full-extent block
    else:
        assert tm % 8 == 0, "row tile must be a multiple of 8 when tm < N"

    num_blocks = (N + tm - 1) // tm

    target2d = target.reshape(N, 1).astype(jnp.int32)
    mask2d = mask.reshape(N, 1).astype(jnp.float32)

    kernel = functools.partial(
        _ls_loss_kernel,
        confidence=confidence,
        smooth_val=smooth_val,
        n_rows=N,
        tm=tm,
    )

    partials = pl.pallas_call(
        kernel,
        out_shape=jax.ShapeDtypeStruct((num_blocks, 1), jnp.float32),
        grid_spec=pltpu.PrefetchScalarGridSpec(
            num_scalar_prefetch=0,
            grid=(num_blocks,),
            in_specs=[
                pl.BlockSpec((tm, C), lambda i: (i, 0)),
                pl.BlockSpec((tm, 1), lambda i: (i, 0)),
                pl.BlockSpec((tm, 1), lambda i: (i, 0)),
            ],
            out_specs=pl.BlockSpec((1, 1), lambda i: (i, 0),
                                   memory_space=pltpu.SMEM),
        ),
        compiler_params=pltpu.CompilerParams(
            dimension_semantics=("parallel",),
            vmem_limit_bytes=48 * 1024 * 1024,
        ),
    )(pred, target2d, mask2d)

    # Final mean in the wrapper (mean over ALL rows, matching the reference).
    return jnp.sum(partials) / jnp.float32(N)


def _reference(pred, target, mask, *, classes, smoothing):
    confidence = 1.0 - smoothing
    logp = jax.nn.log_softmax(pred.astype(jnp.float32), axis=-1)
    logp = logp * mask[:, None]
    true_dist = jnp.full_like(logp, smoothing / (classes - 1))
    true_dist = true_dist.at[jnp.arange(pred.shape[0]), target].set(confidence)
    return jnp.mean(jnp.sum(-true_dist * logp, axis=-1))


if __name__ == "__main__":
    CLASSES = 128
    SMOOTHING = 0.1
    key = jax.random.PRNGKey(0)

    # Case 1: small batch, default (auto) tile -> single full-extent block.
    B1 = 16
    k1, k2, k3, key = jax.random.split(key, 4)
    pred1 = jax.random.normal(k1, (B1, CLASSES), dtype=jnp.float32)
    tgt1 = jax.random.randint(k2, (B1,), 0, CLASSES, dtype=jnp.int32)
    msk1 = (jax.random.uniform(k3, (B1,)) > 0.25).astype(jnp.float32)

    loss1 = label_smoothing_loss_audio(
        pred1, tgt1, msk1, classes=CLASSES, smoothing=SMOOTHING)
    loss1 = jax.block_until_ready(loss1)
    ref1 = _reference(pred1, tgt1, msk1, classes=CLASSES, smoothing=SMOOTHING)
    assert jnp.allclose(loss1, ref1, rtol=1e-5, atol=1e-5), (loss1, ref1)

    # Case 2: batch not divisible by the tile (tm=8, N=20) -> multi-block grid
    # with a padded tail block, exercising the tail-row masking path.
    B2 = 20
    k1, k2, k3, key = jax.random.split(key, 4)
    pred2 = jax.random.normal(k1, (B2, CLASSES), dtype=jnp.float32)
    tgt2 = jax.random.randint(k2, (B2,), 0, CLASSES, dtype=jnp.int32)
    msk2 = (jax.random.uniform(k3, (B2,)) > 0.25).astype(jnp.float32)

    loss2 = label_smoothing_loss_audio(
        pred2, tgt2, msk2, classes=CLASSES, smoothing=SMOOTHING, tm=8)
    loss2 = jax.block_until_ready(loss2)
    ref2 = _reference(pred2, tgt2, msk2, classes=CLASSES, smoothing=SMOOTHING)
    assert jnp.allclose(loss2, ref2, rtol=1e-5, atol=1e-5), (loss2, ref2)

    print("KERNEL_OK")
</pallas_src>

<mosaic_0001>
module attributes {stable_mosaic.version = 11 : i64} {
  func.func @_ls_loss_kernel(%arg0: i32, %arg1: memref<16x128xf32, #tpu.memory_space<vmem>>, %arg2: memref<16x1xi32, #tpu.memory_space<vmem>>, %arg3: memref<16x1xf32, #tpu.memory_space<vmem>>, %arg4: memref<1x1xf32, #tpu.memory_space<smem>>) attributes {dimension_semantics = [#tpu.dimension_semantics<parallel>], iteration_bounds = array<i64: 1>, scalar_prefetch = 0 : i64, scratch_operands = 0 : i64, tpu.core_type = #tpu.core_type<tc>, window_params = [{transform_indices = @transform_0, window_bounds = array<i64: 16, 128>}, {transform_indices = @transform_1, window_bounds = array<i64: 16, 1>}, {transform_indices = @transform_2, window_bounds = array<i64: 16, 1>}, {transform_indices = @transform_3, window_bounds = array<i64: 1, 1>}]} {
    %c0 = arith.constant 0 : index
    %c0_0 = arith.constant 0 : index
    %0 = vector.load %arg1[%c0, %c0_0] : memref<16x128xf32, #tpu.memory_space<vmem>>, vector<16x128xf32>
    %cst = arith.constant dense<0xFF800000> : vector<16xf32>
    %1 = vector.multi_reduction <maximumf>, %0, %cst [1] : vector<16x128xf32> to vector<16xf32>
    %2 = vector.shape_cast %1 : vector<16xf32> to vector<16x1xf32>
    %3 = vector.broadcast %2 : vector<16x1xf32> to vector<16x128xf32>
    %4 = arith.subf %0, %3 : vector<16x128xf32>
    %5 = math.exp %4 : vector<16x128xf32>
    %cst_1 = arith.constant dense<0.000000e+00> : vector<16xf32>
    %6 = vector.multi_reduction <add>, %5, %cst_1 [1] : vector<16x128xf32> to vector<16xf32>
    %7 = vector.shape_cast %6 : vector<16xf32> to vector<16x1xf32>
    %8 = math.log %7 : vector<16x1xf32>
    %cst_2 = arith.constant dense<0.000000e+00> : vector<16xf32>
    %9 = vector.multi_reduction <add>, %4, %cst_2 [1] : vector<16x128xf32> to vector<16xf32>
    %10 = vector.shape_cast %9 : vector<16xf32> to vector<16x1xf32>
    %c0_3 = arith.constant 0 : index
    %c0_4 = arith.constant 0 : index
    %11 = vector.load %arg2[%c0_3, %c0_4] : memref<16x1xi32, #tpu.memory_space<vmem>>, vector<16x1xi32>
    %12 = tpu.iota {dimensions = array<i32: 1>} : vector<16x128xi32>
    %13 = vector.broadcast %11 : vector<16x1xi32> to vector<16x128xi32>
    %14 = arith.cmpi eq, %12, %13 : vector<16x128xi32>
    %cst_5 = arith.constant 0.000000e+00 : f32
    %15 = vector.broadcast %cst_5 : f32 to vector<16x128xf32>
    %16 = arith.select %14, %4, %15 : vector<16x128xi1>, vector<16x128xf32>
    %cst_6 = arith.constant dense<0.000000e+00> : vector<16xf32>
    %17 = vector.multi_reduction <add>, %16, %cst_6 [1] : vector<16x128xf32> to vector<16xf32>
    %18 = vector.shape_cast %17 : vector<16xf32> to vector<16x1xf32>
    %cst_7 = arith.constant 1.280000e+02 : f32
    %19 = vector.broadcast %cst_7 : f32 to vector<16x1xf32>
    %20 = arith.mulf %19, %8 : vector<16x1xf32>
    %21 = arith.subf %10, %20 : vector<16x1xf32>
    %cst_8 = arith.constant 7.87401571E-4 : f32
    %22 = vector.broadcast %cst_8 : f32 to vector<16x1xf32>
    %23 = arith.mulf %22, %21 : vector<16x1xf32>
    %24 = arith.subf %18, %8 : vector<16x1xf32>
    %cst_9 = arith.constant 0.899212599 : f32
    %25 = vector.broadcast %cst_9 : f32 to vector<16x1xf32>
    %26 = arith.mulf %25, %24 : vector<16x1xf32>
    %27 = arith.addf %23, %26 : vector<16x1xf32>
    %cst_10 = arith.constant 0.000000e+00 : f32
    %28 = vector.broadcast %cst_10 : f32 to vector<16x1xf32>
    %29 = arith.subf %28, %27 : vector<16x1xf32>
    %30 = tpu.iota {dimensions = array<i32: 0>} : vector<16x1xi32>
    %c16_i32 = arith.constant 16 : i32
    %31 = arith.muli %arg0, %c16_i32 : i32
    %32 = vector.broadcast %31 : i32 to vector<16x1xi32>
    %33 = arith.addi %32, %30 : vector<16x1xi32>
    %c16_i32_11 = arith.constant 16 : i32
    %34 = vector.broadcast %c16_i32_11 : i32 to vector<16x1xi32>
    %35 = arith.cmpi slt, %33, %34 : vector<16x1xi32>
    %c0_12 = arith.constant 0 : index
    %c0_13 = arith.constant 0 : index
    %36 = vector.load %arg3[%c0_12, %c0_13] : memref<16x1xf32, #tpu.memory_space<vmem>>, vector<16x1xf32>
    %37 = arith.mulf %29, %36 : vector<16x1xf32>
    %cst_14 = arith.constant 0.000000e+00 : f32
    %38 = vector.broadcast %cst_14 : f32 to vector<16x1xf32>
    %39 = arith.select %35, %37, %38 : vector<16x1xi1>, vector<16x1xf32>
    %40 = vector.shape_cast %39 : vector<16x1xf32> to vector<1x16x1xf32>
    %cst_15 = arith.constant dense<0.000000e+00> : vector<1xf32>
    %41 = vector.multi_reduction <add>, %40, %cst_15 [1, 2] : vector<1x16x1xf32> to vector<1xf32>
    %42 = vector.shape_cast %41 : vector<1xf32> to vector<1x1x1xf32>
    %43 = vector.extract %42[0, 0, 0] : f32 from vector<1x1x1xf32>
    %c0_16 = arith.constant 0 : index
    %c0_17 = arith.constant 0 : index
    %44 = memref.load %arg4[%c0_16, %c0_17] : memref<1x1xf32, #tpu.memory_space<smem>>
    memref.store %43, %arg4[%c0_16, %c0_17] : memref<1x1xf32, #tpu.memory_space<smem>>
    return
  }
  func.func @transform_0(%arg0: i32) -> (i32, i32) {
    %c0_i32 = arith.constant 0 : i32
    %c0_i32_0 = arith.constant 0 : i32
    return %arg0, %c0_i32 : i32, i32
  }
  func.func @transform_1(%arg0: i32) -> (i32, i32) {
    %c0_i32 = arith.constant 0 : i32
    %c0_i32_0 = arith.constant 0 : i32
    return %arg0, %c0_i32 : i32, i32
  }
  func.func @transform_2(%arg0: i32) -> (i32, i32) {
    %c0_i32 = arith.constant 0 : i32
    %c0_i32_0 = arith.constant 0 : i32
    return %arg0, %c0_i32 : i32, i32
  }
  func.func @transform_3(%arg0: i32) -> (i32, i32) {
    %c0_i32 = arith.constant 0 : i32
    %c0_i32_0 = arith.constant 0 : i32
    return %arg0, %c0_i32 : i32, i32
  }
}

</mosaic_0001>

<bundles_post_ra>
// kernel: tpu_custom_call.1
= control target key start
LH: loop header
LB: loop body
LE: loop exit
PB: predicated region body
PF: predicated region fallthrough
CT: control target
= control target key end

     0   :  { %v144_v2 = vmov 0   ;;  %s187_s0 = inlined_call_operand.vmem [shape: f32[16,128], index: 0, kind: input, shape index: {}]   ;;  %s188_s1 = inlined_call_operand.vmem [shape: s32[16,1], index: 1, kind: input, shape index: {}]   ;;  %s189_s2 = inlined_call_operand.vmem [shape: f32[16,1], index: 2, kind: input, shape index: {}]   ;;  %s190_s3 = inlined_call_operand.hbm [shape: f32[1,1], index: 3, kind: output, shape index: {}]  }
   0x1   :  { %v15_v0 = vld [vmem:[%s187_s0] sm:$0xff]  ;;  %120 = vset.pattern.permute.xlu1 %v144_v2 }
   0x2   :  { %v39_v1 = vld [vmem:[%s188_s1] sm:$0xff]  ;;  %17 = vmax.xlane.f32.xlu0 %v15_v0 }
   0x3   :  { %8 = vsyncpa [#allocation3], 0  ;;  %44 = vperm.xlu1 %120, %v39_v1   ;;  %121 = vset.pattern.permute.xlu0 %v144_v2  ;;  %v16_v3 = vld [vmem:[%s187_s0 + $0x8] sm:$0xff]  ;;  %v41_v8 = vlaneseq  ;;  %v80_v41 = vld [vmem:[%s189_s2] sm:$0xff]  ;;  %vm86_vm2 = vcmask 7168   ;;  %s145_s25 = smov [#allocation2]  }
   0x4   :  { %v40_v4 = vld [vmem:[%s188_s1 + $0x8] sm:$0xff] }
   0x5   :  { %v42_v10 = vand.u32 127, %v41_v8  ;;  %v81_v43 = vld [vmem:[%s189_s2 + $0x8] sm:$0xff]  ;;  %s106_s2 = sshll.u32 %s190_s3, 4  ;;  %s107_s2 = int_to_ptr.hbm [resolvable:$true] %s106_s2 }
   0xa   :  { %19 = vmax.xlane.f32.xlu0 %v16_v3 }
   0xb   :  { %47 = vperm.xlu1 %120, %v40_v4  }
  0x75   :  { %v18_v5 = vpop.xlane.xlu0 %17  ;;  %v45_v6 = vpop.permute.xlu1 %44 }
  0x76   :  { %v21_v7 = vsub.f32 %v15_v0, %v18_v5  ;;  %vm49_vm1 = vcmp.eq.s32.totalorder %v42_v10, %v45_v6 }
  0x78   :  { %35 = vadd.xlane.f32.xlu0 %v21_v7  ;;  %v23_v9 = vmul.f32 1.442695, %v21_v7  ;;  %v51_v18 = vsel %vm49_vm1, %v21_v7, 0.0 }
  0x7a   :  { %122 = vpow2.f32 %v23_v9 }
  0x7d   :  { %v20_v11 = vpop.xlane.xlu0 %19  ;;  %v48_v12 = vpop.permute.xlu1 %47 }
  0x7e   :  { %v22_v13 = vsub.f32 %v16_v3, %v20_v11  ;;  %vm50_vm0 = vcmp.eq.s32.totalorder %v42_v10, %v48_v12 }
  0x80   :  { %v123_v14 = vpop.eup %122  ;;  %v25_v15 = vmul.f32 1.442695, %v22_v13  ;;  %37 = vadd.xlane.f32.xlu1 %v22_v13  ;;  %v52_v16 = vsel %vm50_vm0, %v22_v13, 0.0 }
  0x81   :  { %27 = vadd.xlane.f32.xlu2 %v123_v14  ;;  %55 = vadd.xlane.f32.xlu0 %v52_v16 }
  0x82   :  { %124 = vpow2.f32 %v25_v15 }
  0x88   :  { %v125_v17 = vpop.eup %124 }
  0x89   :  { %29 = vadd.xlane.f32.xlu2 %v125_v17 }
  0x91   :  { %53 = vadd.xlane.f32.xlu2 %v51_v18 }
  0xeb   :  { %v36_v21 = vpop.xlane.xlu0 %35 }
  0xf3   :  { %v38_v33 = vpop.xlane.xlu1 %37 }
  0xf4   :  { %v28_v19 = vpop.xlane.xlu2 %27  ;;  %v56_v29 = vpop.xlane.xlu0 %55 }
  0xf5   :  { %126 = vlog2.f32 %v28_v19 }
  0xfb   :  { %v127_v20 = vpop.eup %126 }
  0xfc   :  { %v32_v22 = vmul.f32 0.6931472, %v127_v20  ;;  %v30_v23 = vpop.xlane.xlu2 %29 }
  0xfd   :  { %128 = vlog2.f32 %v30_v23 }
  0xfe   :  { %v57_v24 = vmul.f32 128.0, %v32_v22 }
 0x100   :  { %v59_v26 = vsub.f32 %v36_v21, %v57_v24 }
 0x102   :  { %v61_v34 = vmul.f32 0.0007874016, %v59_v26 }
 0x103   :  { %v129_v25 = vpop.eup %128 }
 0x104   :  { %v34_v27 = vmul.f32 0.6931472, %v129_v25  ;;  %v54_v28 = vpop.xlane.xlu2 %53 }
 0x105   :  { %v63_v30 = vsub.f32 %v54_v28, %v32_v22 }
 0x106   :  { %v58_v31 = vmul.f32 128.0, %v34_v27  ;;  %v64_v32 = vsub.f32 %v56_v29, %v34_v27 }
 0x107   :  { %v65_v35 = vmul.f32 0.8992126, %v63_v30 }
 0x108   :  { %v60_v36 = vsub.f32 %v38_v33, %v58_v31  ;;  %v66_v39 = vmul.f32 0.8992126, %v64_v32 }
 0x109   :  { %v67_v37 = vadd.f32 %v65_v35, %v61_v34 }
 0x10a   :  { %v62_v38 = vmul.f32 0.0007874016, %v60_v36 }
 0x10b   :  { %v69_v40 = vsub.f32 0.0, %v67_v37 }
 0x10c   :  { %v68_v42 = vadd.f32 %v66_v39, %v62_v38 }
 0x10d   :  { %v82_v45 = vmul.f32 %v80_v41, %v69_v40 }
 0x10e   :  { %v70_v44 = vsub.f32 0.0, %v68_v42 }
 0x10f   :  { %v87_v47 = vsel %vm86_vm2, %v82_v45, 0.0 }
 0x110   :  { %v83_v46 = vmul.f32 %v81_v43, %v70_v44 }
 0x112   :  { %v88_v48 = vsel %vm86_vm2, %v83_v46, 0.0 }
 0x113   :  { %v89_v49 = vadd.f32 %v88_v48, %v87_v47 }
 0x115   :  { %90 = vadd.xlane.f32.xlu2 %v89_v49 }
 0x188   :  { %v91_v50 = vpop.xlane.xlu2 %90 }
 0x189   :  { %v92_v51 = vrot.slane %v91_v50, 4 }
 0x18b   :  { %v93_v52 = vadd.f32 %v92_v51, %v91_v50 }
 0x18d   :  { %v94_v53 = vrot.slane %v93_v52, 2 }
 0x18f   :  { %v95_v54 = vadd.f32 %v94_v53, %v93_v52 }
 0x191   :  { %v96_v55 = vrot.slane %v95_v54, 1 }
 0x193   :  { %v97_v56 = vadd.f32 %v96_v55, %v95_v54 }
 0x195   :  { %116 = vpush %v97_v56 }
 0x1c6   :  { %s117_s24 = spop %116 }
 0x1c7   :  { %100 = sst [smem:[#allocation2]] %s117_s24 }
 0x1c8   :  { %109 = dma.smem_to_hbm %s145_s25, 16, %s107_s2, [#allocation3]  }
 0x1c9   :  { %142 = dma.done.wait [#allocation3], 16  }
 0x1ca   :  { %143 = vsyncadd [#allocation3], 4294967280 }
 0x1cb   :  { %114 = sfence }
 0x1cc   :  { %115 = vsyncpa [#allocation3], 1 }

</bundles_post_ra>
